<compile_context>
chip_gen: v6e
topology: v6e:2x2x1
jax: 0.10.0
libtpu: 0.0.40
codegen_flags: <defaults>
</compile_context>

<pallas_src>
import functools

import jax
import jax.numpy as jnp
from jax import lax
from jax.experimental import pallas as pl
from jax.experimental.pallas import tpu as pltpu

HIDDEN = 256
BN_EPS = 1e-5
LANE = 128


def actor_kernel(x_ref, w1_ref, g_ref, beta_ref, w2_ref, b2_ref,
                 wh_ref, bh_ref, out_ref, *, action_size, use_mxu_stats):
    # x already cast to the matmul dtype and lane-padded in the wrapper.
    x = x_ref[...]

    # ---- fc1 (bias omitted: exactly cancelled by training-mode BatchNorm) ----
    h1 = jnp.dot(x, w1_ref[...], preferred_element_type=jnp.float32)
    b = h1.shape[0]
    inv_b = jnp.float32(1.0 / b)

    # ---- BatchNorm1d (training mode): fused one-pass stats, folded affine ----
    # One reduction over [B, 2*HIDDEN] instead of two over [B, HIDDEN].
    stats = jnp.concatenate([h1, h1 * h1], axis=1)
    if use_mxu_stats:
        # Large batch: do the column sums on the (otherwise idle) MXU.
        ones = jnp.ones((1, b), jnp.float32)
        sums = jnp.dot(ones, stats, preferred_element_type=jnp.float32)
    else:
        sums = jnp.sum(stats, axis=0, keepdims=True)
    mean = sums[:, :HIDDEN] * inv_b
    mean_sq = sums[:, HIDDEN:] * inv_b
    var = jnp.maximum(mean_sq - mean * mean, 0.0)         # guard tiny negatives
    scale = g_ref[...] * lax.rsqrt(var + BN_EPS)
    shift = beta_ref[...] - mean * scale
    h1a = jnp.maximum(h1 * scale + shift, 0.0)            # ReLU

    # ---- fc2 + ReLU ----
    h2 = jnp.maximum(
        jnp.dot(h1a.astype(w2_ref.dtype), w2_ref[...],
                preferred_element_type=jnp.float32) + b2_ref[...],
        0.0)

    # ---- fused heads: one lane-dense matmul producing [mu | sigma | pad] ----
    z = jnp.dot(h2.astype(wh_ref.dtype), wh_ref[...],
                preferred_element_type=jnp.float32) + bh_ref[...]
    mu = 2.0 * jnp.tanh(z)
    # Branch-free, numerically-stable softplus.
    sigma = jnp.maximum(z, 0.0) + jnp.log1p(jnp.exp(-jnp.abs(z)))
    lane = lax.broadcasted_iota(jnp.int32, z.shape, 1)
    out_ref[...] = jnp.where(lane < action_size, mu, sigma)


def prepare_params(params, *, use_bf16_matmul=True):
    """One-time packing of weights for the kernel (do this once, not per call):
       - fuse mu/sigma head weights into one [HIDDEN, lane-padded] matrix,
       - zero-pad the fc1 input dim to a 128-lane multiple,
       - drop fc1 bias (cancelled by training-mode BatchNorm),
       - optionally (default ON) cast matmul weights to bf16: every TPU
         generation's MXU (v5e/v6e/v7x) is natively bf16, so this halves
         weight DMA with no MXU-rate penalty anywhere; biases / BN affine stay
         f32 since they act post-accumulation."""
    state_size = params["w1"].shape[0]
    action_size = params["wmu"].shape[1]
    state_pad = max(pl.cdiv(state_size, LANE) * LANE, LANE)
    head_pad = max(pl.cdiv(2 * action_size, LANE) * LANE, LANE)
    wdtype = jnp.bfloat16 if use_bf16_matmul else jnp.float32

    w1 = jnp.zeros((state_pad, HIDDEN), jnp.float32)
    w1 = w1.at[:state_size, :].set(params["w1"])

    w_head = jnp.zeros((HIDDEN, head_pad), jnp.float32)
    w_head = w_head.at[:, :action_size].set(params["wmu"])
    w_head = w_head.at[:, action_size:2 * action_size].set(params["ws"])
    b_head = jnp.zeros((1, head_pad), jnp.float32)
    b_head = b_head.at[:, :action_size].set(params["bmu"])
    b_head = b_head.at[:, action_size:2 * action_size].set(params["bs"])

    return {
        "w1": w1.astype(wdtype),
        "gamma": params["gamma"],
        "beta": params["beta"],
        "w2": params["w2"].astype(wdtype),
        "b2": params["b2"],
        "w_head": w_head.astype(wdtype),
        "b_head": b_head,
        "state_size": state_size,
        "state_pad": state_pad,
        "action_size": action_size,
        "head_pad": head_pad,
        "compute_dtype": wdtype,
    }


def _vmem_budget_bytes(B, state_pad, head_pad, wbytes):
    """Conservative single-block VMEM estimate (weights + I/O + f32 temps)."""
    weights = (state_pad * HIDDEN + HIDDEN * HIDDEN + HIDDEN * head_pad) * wbytes
    small = (4 * HIDDEN + 2 * head_pad) * 4
    io = B * (state_pad * wbytes + head_pad * 4)
    # live f32 intermediates per row: h1 + stats-concat + h1a + h2 + z/mu/sigma
    temps = B * (HIDDEN * 4 + 2 * HIDDEN * 4 + 2 * HIDDEN * 4 + 3 * head_pad * 4)
    return int(1.5 * (weights + small + io + temps))


def actor_net_forward(x, prepped):
    """x: [B, state_size] float32. prepped: output of prepare_params()."""
    B, state_size = x.shape
    assert state_size == prepped["state_size"]
    state_pad = prepped["state_pad"]
    action_size = prepped["action_size"]
    head_pad = prepped["head_pad"]
    wbytes = jnp.dtype(prepped["compute_dtype"]).itemsize

    # Lane-pad the state dim and cast in the wrapper (no in-kernel cast pass).
    x_in = jnp.pad(x, ((0, 0), (0, state_pad - state_size)))
    x_in = x_in.astype(prepped["compute_dtype"])

    vmem_bytes = _vmem_budget_bytes(B, state_pad, head_pad, wbytes)
    if vmem_bytes > (64 << 20):
        # Whole-batch single block no longer fits v7x's 64 MiB physical VMEM.
        raise ValueError(
            f"Batch {B} needs ~{vmem_bytes >> 20} MiB VMEM; tile the batch "
            "(two-pass BN) instead of a single whole-batch block.")
    vmem_limit = min(max(vmem_bytes, 16 << 20), 64 << 20)

    flops = 2 * B * (state_pad * HIDDEN + HIDDEN * HIDDEN + HIDDEN * head_pad)
    use_mxu_stats = B >= 128
    if use_mxu_stats:
        flops += 2 * B * 2 * HIDDEN
    cost = pl.CostEstimate(
        flops=flops,
        transcendentals=3 * B * head_pad,
        bytes_accessed=(
            (state_pad * HIDDEN + HIDDEN * HIDDEN + HIDDEN * head_pad) * wbytes
            + (4 * HIDDEN + 2 * head_pad) * 4
            + B * state_pad * wbytes + B * head_pad * 4))

    kernel = functools.partial(actor_kernel,
                               action_size=action_size,
                               use_mxu_stats=use_mxu_stats)

    # Single invocation (no grid): whole arrays live in VMEM, no pipelining
    # overhead. BN batch stats therefore cover the full batch, matching
    # PyTorch training-mode BatchNorm exactly.
    out = pl.pallas_call(
        kernel,
        out_shape=jax.ShapeDtypeStruct((B, head_pad), jnp.float32),
        compiler_params=pltpu.CompilerParams(vmem_limit_bytes=vmem_limit),
        cost_estimate=cost,
    )(x_in, prepped["w1"], prepped["gamma"], prepped["beta"],
      prepped["w2"], prepped["b2"], prepped["w_head"], prepped["b_head"])

    mu = out[:, :action_size]
    sigma = out[:, action_size:2 * action_size]
    return mu, sigma


def init_params(key, state_size, action_size):
    ks = jax.random.split(key, 8)
    scale1 = 1.0 / jnp.sqrt(state_size)
    scaleh = 1.0 / jnp.sqrt(HIDDEN)
    return {
        # weights stored as [in, out] (transpose of torch's [out, in])
        "w1": jax.random.uniform(ks[0], (state_size, HIDDEN), jnp.float32, -scale1, scale1),
        "b1": jax.random.uniform(ks[1], (1, HIDDEN), jnp.float32, -scale1, scale1),
        "gamma": jnp.ones((1, HIDDEN), jnp.float32),
        "beta": jnp.zeros((1, HIDDEN), jnp.float32),
        "w2": jax.random.uniform(ks[2], (HIDDEN, HIDDEN), jnp.float32, -scaleh, scaleh),
        "b2": jax.random.uniform(ks[3], (1, HIDDEN), jnp.float32, -scaleh, scaleh),
        "wmu": jax.random.uniform(ks[4], (HIDDEN, action_size), jnp.float32, -scaleh, scaleh),
        "bmu": jax.random.uniform(ks[5], (1, action_size), jnp.float32, -scaleh, scaleh),
        "ws": jax.random.uniform(ks[6], (HIDDEN, action_size), jnp.float32, -scaleh, scaleh),
        "bs": jax.random.uniform(ks[7], (1, action_size), jnp.float32, -scaleh, scaleh),
    }


def actor_net_ref(x, p):
    """Faithful f32 reference of the PyTorch module (includes fc1 bias; the
    kernel drops it because training-mode BN cancels it exactly)."""
    h1 = x @ p["w1"] + p["b1"]
    mean = jnp.mean(h1, axis=0, keepdims=True)
    var = jnp.mean((h1 - mean) ** 2, axis=0, keepdims=True)
    h1 = jnp.maximum((h1 - mean) / jnp.sqrt(var + BN_EPS) * p["gamma"] + p["beta"], 0.0)
    h2 = jnp.maximum(h1 @ p["w2"] + p["b2"], 0.0)
    mu = 2.0 * jnp.tanh(h2 @ p["wmu"] + p["bmu"])
    z = h2 @ p["ws"] + p["bs"]
    sigma = jnp.where(z > 20.0, z, jnp.log1p(jnp.exp(jnp.minimum(z, 20.0))))
    return mu, sigma


if __name__ == "__main__":
    key = jax.random.PRNGKey(0)
    k_x, k_x2, k_p = jax.random.split(key, 3)

    batch, state_size, action_size = 8, 32, 4
    x = jax.random.normal(k_x, (batch, state_size), jnp.float32)
    params = init_params(k_p, state_size, action_size)
    mu_ref, sigma_ref = actor_net_ref(x, params)

    # --- f32 path: exact module semantics, tight tolerance ---
    prepped_f32 = prepare_params(params, use_bf16_matmul=False)
    mu, sigma = jax.block_until_ready(actor_net_forward(x, prepped_f32))
    assert mu.shape == (batch, action_size) and sigma.shape == (batch, action_size)
    assert jnp.allclose(mu, mu_ref, atol=1e-4, rtol=1e-4)
    assert jnp.allclose(sigma, sigma_ref, atol=1e-4, rtol=1e-4)
    assert bool(jnp.all(sigma > 0.0))

    # --- bf16-operand path (default; native MXU rate on v5e/v6e/v7x) ---
    prepped = prepare_params(params)          # use_bf16_matmul=True by default
    mu_b, sigma_b = jax.block_until_ready(actor_net_forward(x, prepped))
    assert jnp.allclose(mu_b, mu_ref, atol=1e-1, rtol=1e-1)
    assert jnp.allclose(sigma_b, sigma_ref, atol=1e-1, rtol=1e-1)
    assert bool(jnp.all(sigma_b > 0.0))

    # --- batched call (amortizes launch/DMA overhead; exercises MXU-stats) ---
    big_b = 256
    x_big = jax.random.normal(k_x2, (big_b, state_size), jnp.float32)
    mu_big_ref, sigma_big_ref = actor_net_ref(x_big, params)
    mu_big, sigma_big = jax.block_until_ready(actor_net_forward(x_big, prepped))
    assert mu_big.shape == (big_b, action_size)
    assert jnp.allclose(mu_big, mu_big_ref, atol=1e-1, rtol=1e-1)
    assert jnp.allclose(sigma_big, sigma_big_ref, atol=1e-1, rtol=1e-1)
    assert bool(jnp.all(sigma_big > 0.0))

    print("KERNEL_OK")
</pallas_src>

<mosaic_0001>
module attributes {stable_mosaic.version = 11 : i64} {
  func.func @actor_kernel(%arg0: memref<8x128xf32, #tpu.memory_space<vmem>>, %arg1: memref<128x256xf32, #tpu.memory_space<vmem>>, %arg2: memref<1x256xf32, #tpu.memory_space<vmem>>, %arg3: memref<1x256xf32, #tpu.memory_space<vmem>>, %arg4: memref<256x256xf32, #tpu.memory_space<vmem>>, %arg5: memref<1x256xf32, #tpu.memory_space<vmem>>, %arg6: memref<256x128xf32, #tpu.memory_space<vmem>>, %arg7: memref<1x128xf32, #tpu.memory_space<vmem>>, %arg8: memref<8x128xf32, #tpu.memory_space<vmem>>) attributes {dimension_semantics = [], scalar_prefetch = 0 : i64, scratch_operands = 0 : i64, tpu.core_type = #tpu.core_type<tc>} {
    %c0 = arith.constant 0 : index
    %c0_0 = arith.constant 0 : index
    %0 = vector.load %arg0[%c0, %c0_0] : memref<8x128xf32, #tpu.memory_space<vmem>>, vector<8x128xf32>
    %c0_1 = arith.constant 0 : index
    %c0_2 = arith.constant 0 : index
    %1 = vector.load %arg1[%c0_1, %c0_2] : memref<128x256xf32, #tpu.memory_space<vmem>>, vector<128x256xf32>
    %cst = arith.constant dense<0.000000e+00> : vector<8x256xf32>
    %2 = tpu.matmul %0, %1, %cst {dimension_numbers = #tpu.dot_dimension_numbers<[1], [0], [0], [1], [0, 0, 1, 1], [], []>} : vector<8x128xf32>, vector<128x256xf32>, vector<8x256xf32> -> vector<8x256xf32>
    %3 = arith.mulf %2, %2 : vector<8x256xf32>
    %4 = tpu.concatenate %2, %3 in 1 : vector<8x256xf32>, vector<8x256xf32> -> vector<8x512xf32>
    %cst_3 = arith.constant dense<0.000000e+00> : vector<512xf32>
    %5 = vector.multi_reduction <add>, %4, %cst_3 [0] : vector<8x512xf32> to vector<512xf32>
    %6 = vector.shape_cast %5 : vector<512xf32> to vector<1x512xf32>
    %7 = vector.extract_strided_slice %6 {offsets = [0, 0], sizes = [1, 256], strides = [1, 1]} : vector<1x512xf32> to vector<1x256xf32>
    %cst_4 = arith.constant 1.250000e-01 : f32
    %8 = vector.broadcast %cst_4 : f32 to vector<1x256xf32>
    %9 = arith.mulf %7, %8 : vector<1x256xf32>
    %10 = vector.extract_strided_slice %6 {offsets = [0, 256], sizes = [1, 256], strides = [1, 1]} : vector<1x512xf32> to vector<1x256xf32>
    %cst_5 = arith.constant 1.250000e-01 : f32
    %11 = vector.broadcast %cst_5 : f32 to vector<1x256xf32>
    %12 = arith.mulf %10, %11 : vector<1x256xf32>
    %13 = arith.mulf %9, %9 : vector<1x256xf32>
    %14 = arith.subf %12, %13 : vector<1x256xf32>
    %cst_6 = arith.constant 0.000000e+00 : f32
    %15 = vector.broadcast %cst_6 : f32 to vector<1x256xf32>
    %16 = arith.maximumf %14, %15 : vector<1x256xf32>
    %c0_7 = arith.constant 0 : index
    %c0_8 = arith.constant 0 : index
    %17 = vector.load %arg2[%c0_7, %c0_8] : memref<1x256xf32, #tpu.memory_space<vmem>>, vector<1x256xf32>
    %cst_9 = arith.constant 9.99999974E-6 : f32
    %18 = vector.broadcast %cst_9 : f32 to vector<1x256xf32>
    %19 = arith.addf %16, %18 : vector<1x256xf32>
    %20 = math.rsqrt %19 : vector<1x256xf32>
    %21 = arith.mulf %17, %20 : vector<1x256xf32>
    %c0_10 = arith.constant 0 : index
    %c0_11 = arith.constant 0 : index
    %22 = vector.load %arg3[%c0_10, %c0_11] : memref<1x256xf32, #tpu.memory_space<vmem>>, vector<1x256xf32>
    %23 = arith.mulf %9, %21 : vector<1x256xf32>
    %24 = arith.subf %22, %23 : vector<1x256xf32>
    %25 = vector.broadcast %21 : vector<1x256xf32> to vector<8x256xf32>
    %26 = arith.mulf %2, %25 : vector<8x256xf32>
    %27 = vector.broadcast %24 : vector<1x256xf32> to vector<8x256xf32>
    %28 = arith.addf %26, %27 : vector<8x256xf32>
    %cst_12 = arith.constant 0.000000e+00 : f32
    %29 = vector.broadcast %cst_12 : f32 to vector<8x256xf32>
    %30 = arith.maximumf %28, %29 : vector<8x256xf32>
    %c0_13 = arith.constant 0 : index
    %c0_14 = arith.constant 0 : index
    %31 = vector.load %arg4[%c0_13, %c0_14] : memref<256x256xf32, #tpu.memory_space<vmem>>, vector<256x256xf32>
    %cst_15 = arith.constant dense<0.000000e+00> : vector<8x256xf32>
    %32 = tpu.matmul %30, %31, %cst_15 {dimension_numbers = #tpu.dot_dimension_numbers<[1], [0], [0], [1], [0, 0, 1, 1], [], []>} : vector<8x256xf32>, vector<256x256xf32>, vector<8x256xf32> -> vector<8x256xf32>
    %c0_16 = arith.constant 0 : index
    %c0_17 = arith.constant 0 : index
    %33 = vector.load %arg5[%c0_16, %c0_17] : memref<1x256xf32, #tpu.memory_space<vmem>>, vector<1x256xf32>
    %34 = vector.broadcast %33 : vector<1x256xf32> to vector<8x256xf32>
    %35 = arith.addf %32, %34 : vector<8x256xf32>
    %cst_18 = arith.constant 0.000000e+00 : f32
    %36 = vector.broadcast %cst_18 : f32 to vector<8x256xf32>
    %37 = arith.maximumf %35, %36 : vector<8x256xf32>
    %c0_19 = arith.constant 0 : index
    %c0_20 = arith.constant 0 : index
    %38 = vector.load %arg6[%c0_19, %c0_20] : memref<256x128xf32, #tpu.memory_space<vmem>>, vector<256x128xf32>
    %cst_21 = arith.constant dense<0.000000e+00> : vector<8x128xf32>
    %39 = tpu.matmul %37, %38, %cst_21 {dimension_numbers = #tpu.dot_dimension_numbers<[1], [0], [0], [1], [0, 0, 1, 1], [], []>} : vector<8x256xf32>, vector<256x128xf32>, vector<8x128xf32> -> vector<8x128xf32>
    %c0_22 = arith.constant 0 : index
    %c0_23 = arith.constant 0 : index
    %40 = vector.load %arg7[%c0_22, %c0_23] : memref<1x128xf32, #tpu.memory_space<vmem>>, vector<1x128xf32>
    %41 = vector.broadcast %40 : vector<1x128xf32> to vector<8x128xf32>
    %42 = arith.addf %39, %41 : vector<8x128xf32>
    %43 = math.tanh %42 : vector<8x128xf32>
    %cst_24 = arith.constant 2.000000e+00 : f32
    %44 = vector.broadcast %cst_24 : f32 to vector<8x128xf32>
    %45 = arith.mulf %44, %43 : vector<8x128xf32>
    %cst_25 = arith.constant 0.000000e+00 : f32
    %46 = vector.broadcast %cst_25 : f32 to vector<8x128xf32>
    %47 = arith.maximumf %42, %46 : vector<8x128xf32>
    %48 = math.absf %42 : vector<8x128xf32>
    %cst_26 = arith.constant 0.000000e+00 : f32
    %49 = vector.broadcast %cst_26 : f32 to vector<8x128xf32>
    %50 = arith.subf %49, %48 : vector<8x128xf32>
    %51 = math.exp %50 : vector<8x128xf32>
    %52 = math.log1p %51 : vector<8x128xf32>
    %53 = arith.addf %47, %52 : vector<8x128xf32>
    %54 = tpu.iota {dimensions = array<i32: 1>} : vector<8x128xi32>
    %c4_i32 = arith.constant 4 : i32
    %55 = vector.broadcast %c4_i32 : i32 to vector<8x128xi32>
    %56 = arith.cmpi slt, %54, %55 : vector<8x128xi32>
    %57 = arith.select %56, %45, %53 : vector<8x128xi1>, vector<8x128xf32>
    %c0_27 = arith.constant 0 : index
    %c0_28 = arith.constant 0 : index
    %58 = vector.load %arg8[%c0_27, %c0_28] : memref<8x128xf32, #tpu.memory_space<vmem>>, vector<8x128xf32>
    tpu.vector_store %arg8[%c0_27, %c0_28], %57 {strides = array<i32>} : memref<8x128xf32, #tpu.memory_space<vmem>>, vector<8x128xf32>,
    return
  }
}

</mosaic_0001>

<bundles_post_ra>
// kernel: tpu_custom_call.1
= control target key start
LH: loop header
LB: loop body
LE: loop exit
PB: predicated region body
PF: predicated region fallthrough
CT: control target
= control target key end

     0   :  { %13 = vsyncpa [#allocation3], 0  ;;  %s858_s0 = inlined_call_operand.hbm [shape: f32[8,128], index: 0, kind: input, shape index: {}]   ;;  %s859_s1 = inlined_call_operand.hbm [shape: f32[128,256], index: 1, kind: input, shape index: {}]   ;;  %s860_s2 = inlined_call_operand.vmem [shape: f32[1,256], index: 2, kind: input, shape index: {}]   ;;  %s861_s3 = inlined_call_operand.vmem [shape: f32[1,256], index: 3, kind: input, shape index: {}]   ;;  %s862_s4 = inlined_call_operand.hbm [shape: f32[256,256], index: 4, kind: input, shape index: {}]   ;;  %s863_s5 = inlined_call_operand.vmem [shape: f32[1,256], index: 5, kind: input, shape index: {}]   ;;  %s864_s6 = inlined_call_operand.hbm [shape: f32[256,128], index: 6, kind: input, shape index: {}]   ;;  %s865_s7 = inlined_call_operand.vmem [shape: f32[1,128], index: 7, kind: input, shape index: {}]   ;;  %s866_s8 = inlined_call_operand.hbm [shape: f32[8,128], index: 8, kind: output, shape index: {}]  }
   0x1   :  { %14 = vsyncpa [#allocation6], 0 }
   0x2   :  { %15 = vsyncpa [#allocation9], 0 }
   0x3   :  { %16 = vsyncpa [#allocation4], 0  ;;  %s759_s27 = smov [#allocation5]  }
   0x4   :  { %s32_s28 = sshll.u32 %s759_s27, 4  ;;  %s33_s28 = int_to_ptr.vmem [resolvable:$true] %s32_s28 }
   0x5   :  { %s659_s29 = scalar_lea.vmem %s33_s28, 4096  ;;  %p664_p1 = scmp.lt.s32.totalorder %s33_s28, %s33_s28 }
   0x6   :  { %p660_p0 = scmp.ne.s32.totalorder %s33_s28, %s659_s29  ;;  %p665_p2 = scmp.lt.s32.totalorder %s659_s29, %s659_s29 }
   0x8   :  { %p666_p3 = por %p665_p2, %p664_p1 }
   0xa   :  { %p667_p4 = pnand %p666_p3, %p660_p0 }
   0xc   :  { %670 = shalt.err (!%p667_p4)
}
   0xd   :  { %s760_s30 = smov 256   ;;  %s761_s9 = smov 16  }
   0xe   :  { %38 = dma.hbm_to_vmem [thread:$0]  %s859_s1, 4096, %s33_s28, [#allocation6], %s760_s30, %s760_s30, %s761_s9  }
   0xf   :  { %s762_s12 = smov [#allocation2]   ;;  %s763_s14 = smov [#allocation7]  }
  0x10   :  { %s23_s13 = sshll.u32 %s762_s12, 4  ;;  %s48_s15 = sshll.u32 %s763_s14, 4  ;;  %s24_s13 = int_to_ptr.vmem [resolvable:$true] %s23_s13  ;;  %s49_s15 = int_to_ptr.vmem [resolvable:$true] %s48_s15 }
  0x11   :  { %s679_s16 = scalar_lea.vmem %s24_s13, 128  ;;  %p684_p6 = scmp.lt.s32.totalorder %s24_s13, %s24_s13 }
  0x12   :  { %p680_p5 = scmp.ne.s32.totalorder %s24_s13, %s679_s16  ;;  %p685_p7 = scmp.lt.s32.totalorder %s679_s16, %s679_s16 }
  0x14   :  { %p686_p8 = por %p685_p7, %p684_p6 }
  0x16   :  { %p687_p9 = pnand %p686_p8, %p680_p5 }
  0x18   :  { %690 = shalt.err (!%p687_p9)
}
  0x19   :  { %26 = dma.hbm_to_vmem [thread:$0]  %s858_s0, 128, %s24_s13, [#allocation3]  }
  0x1a   :  { %s699_s19 = scalar_lea.vmem %s49_s15, 8192  ;;  %p704_p11 = scmp.lt.s32.totalorder %s49_s15, %s49_s15 }
  0x1b   :  { %p700_p10 = scmp.ne.s32.totalorder %s49_s15, %s699_s19  ;;  %p705_p12 = scmp.lt.s32.totalorder %s699_s19, %s699_s19 }
  0x1d   :  { %p706_p13 = por %p705_p12, %p704_p11 }
  0x1f   :  { %p707_p0 = pnand %p706_p13, %p700_p10 }
  0x21   :  { %710 = shalt.err (!%p707_p0)
}
  0x22   :  { %54 = dma.hbm_to_vmem [thread:$0]  %s862_s4, 8192, %s49_s15, [#allocation6], %s760_s30, %s760_s30, %s761_s9  }
  0x23   :  { %s764_s21 = smov [#allocation8]  }
  0x24   :  { %s62_s22 = sshll.u32 %s764_s21, 4  ;;  %s63_s22 = int_to_ptr.vmem [resolvable:$true] %s62_s22 }
  0x25   :  { %s719_s23 = scalar_lea.vmem %s63_s22, 4096  ;;  %p724_p2 = scmp.lt.s32.totalorder %s63_s22, %s63_s22 }
  0x26   :  { %p720_p1 = scmp.ne.s32.totalorder %s63_s22, %s719_s23  ;;  %p725_p3 = scmp.lt.s32.totalorder %s719_s23, %s719_s23 }
  0x28   :  { %p726_p4 = por %p725_p3, %p724_p2 }
  0x2a   :  { %p727_p5 = pnand %p726_p4, %p720_p1 }
  0x2c   :  { %730 = shalt.err (!%p727_p5)
}
  0x2d   :  { %s765_s0 = smov 128   ;;  %s766_s24 = smov 8  }
  0x2e   :  { %68 = dma.hbm_to_vmem [thread:$0]  %s864_s6, 4096, %s63_s22, [#allocation9], %s765_s0, %s765_s0, %s766_s24  }
  0x2f   :  { %751 = dma.done.wait [#allocation3], 128  }
  0x30   :  { %752 = vsyncadd [#allocation3], 4294967168 }
  0x31   :  { %753 = dma.done.wait [#allocation6], 12288  }
  0x32   :  { %754 = vsyncadd [#allocation6], 4294955008 }
  0x33   :  { %755 = dma.done.wait [#allocation9], 4096  }
  0x34   :  { %756 = vsyncadd [#allocation9], 4294963200  ;;  %v767_v0 = vmov 0.0   ;;  %v115_v1 = vld [vmem:[#allocation5 + $0xf8] sm:$0xff]  ;;  %v114_v2 = vld [vmem:[#allocation5 + $0xf0] sm:$0xff] }
  0x35   :  { %180 = vmatprep.mubr.f32.mxu0 %v767_v0  ;;  %v113_v3 = vld [vmem:[#allocation5 + $0xe8] sm:$0xff]  ;;  %116 = vmatprep.subr.mxu0 %v115_v1  ;;  %v112_v4 = vld [vmem:[#allocation5 + $0xe0] sm:$0xff]  ;;  %v111_v5 = vld [vmem:[#allocation5 + $0xd8] sm:$0xff] }
  0x36   :  { %117 = vmatpush1.msra.mxu0 %v114_v2  ;;  %v110_v6 = vld [vmem:[#allocation5 + $0xd0] sm:$0xff]  ;;  %v109_v7 = vld [vmem:[#allocation5 + $0xc8] sm:$0xff]  ;;  %v108_v8 = vld [vmem:[#allocation5 + $0xc0] sm:$0xff] }
  0x37   :  { %118 = vmatprep.subr.mxu0 %v113_v3  ;;  %v107_v9 = vld [vmem:[#allocation5 + $0xb8] sm:$0xff]  ;;  %v106_v10 = vld [vmem:[#allocation5 + $0xb0] sm:$0xff]  ;;  %v105_v11 = vld [vmem:[#allocation5 + $0xa8] sm:$0xff] }
  0x38   :  { %119 = vmatpush1.msra.mxu0 %v112_v4  ;;  %v104_v12 = vld [vmem:[#allocation5 + $0xa0] sm:$0xff]  ;;  %v103_v13 = vld [vmem:[#allocation5 + $0x98] sm:$0xff]  ;;  %v102_v14 = vld [vmem:[#allocation5 + $0x90] sm:$0xff] }
  0x39   :  { %120 = vmatprep.subr.mxu0 %v111_v5  ;;  %v101_v15 = vld [vmem:[#allocation5 + $0x88] sm:$0xff]  ;;  %v100_v16 = vld [vmem:[#allocation5 + $0x80] sm:$0xff]  ;;  %v99_v17 = vld [vmem:[#allocation5 + $0x78] sm:$0xff] }
  0x3a   :  { %121 = vmatpush1.msra.mxu0 %v110_v6  ;;  %v98_v18 = vld [vmem:[#allocation5 + $0x70] sm:$0xff]  ;;  %v97_v19 = vld [vmem:[#allocation5 + $0x68] sm:$0xff]  ;;  %v96_v20 = vld [vmem:[#allocation5 + $0x60] sm:$0xff] }
  0x3b   :  { %122 = vmatprep.subr.mxu0 %v109_v7  ;;  %v95_v21 = vld [vmem:[#allocation5 + $0x58] sm:$0xff]  ;;  %v94_v22 = vld [vmem:[#allocation5 + $0x50] sm:$0xff]  ;;  %v93_v23 = vld [vmem:[#allocation5 + $0x48] sm:$0xff] }
  0x3c   :  { %123 = vmatpush1.msra.mxu0 %v108_v8  ;;  %v92_v24 = vld [vmem:[#allocation5 + $0x40] sm:$0xff]  ;;  %v91_v25 = vld [vmem:[#allocation5 + $0x38] sm:$0xff]  ;;  %v90_v26 = vld [vmem:[#allocation5 + $0x30] sm:$0xff] }
  0x3d   :  { %124 = vmatprep.subr.mxu0 %v107_v9  ;;  %v89_v27 = vld [vmem:[#allocation5 + $0x28] sm:$0xff]  ;;  %v88_v28 = vld [vmem:[#allocation5 + $0x20] sm:$0xff]  ;;  %v87_v29 = vld [vmem:[#allocation5 + $0x18] sm:$0xff] }
  0x3e   :  { %125 = vmatpush1.msra.mxu0 %v106_v10  ;;  %v86_v30 = vld [vmem:[#allocation5 + $0x10] sm:$0xff]  ;;  %v85_v31 = vld [vmem:[#allocation5 + $0x8] sm:$0xff]  ;;  %v84_v32 = vld [vmem:[#allocation5] sm:$0xff] }
  0x3f   :  { %126 = vmatprep.subr.mxu0 %v105_v11  ;;  %v83_v33 = vld [vmem:[#allocation2] sm:$0xff]  ;;  %v327_v35 = vld [vmem:[#allocation7 + $0xf0] sm:$0xff]  ;;  %v326_v36 = vld [vmem:[#allocation7 + $0xe8] sm:$0xff] }
  0x40   :  { %127 = vmatpush1.msra.mxu0 %v104_v12  ;;  %v328_v34 = vld [vmem:[#allocation7 + $0xf8] sm:$0xff]  ;;  %v325_v37 = vld [vmem:[#allocation7 + $0xe0] sm:$0xff]  ;;  %v323_v39 = vld [vmem:[#allocation7 + $0xd0] sm:$0xff] }
  0x41   :  { %128 = vmatprep.subr.mxu0 %v103_v13  ;;  %373 = vmatprep.subr.mxu1 %v328_v34  ;;  %v324_v38 = vld [vmem:[#allocation7 + $0xd8] sm:$0xff]  ;;  %v322_v40 = vld [vmem:[#allocation7 + $0xc8] sm:$0xff]  ;;  %v321_v41 = vld [vmem:[#allocation7 + $0xc0] sm:$0xff] }
  0x42   :  { %129 = vmatpush1.msra.mxu0 %v102_v14  ;;  %374 = vmatpush1.msra.mxu1 %v327_v35  ;;  %v320_v42 = vld [vmem:[#allocation7 + $0xb8] sm:$0xff]  ;;  %v319_v43 = vld [vmem:[#allocation7 + $0xb0] sm:$0xff]  ;;  %v318_v44 = vld [vmem:[#allocation7 + $0xa8] sm:$0xff] }
  0x43   :  { %130 = vmatprep.subr.mxu0 %v101_v15  ;;  %375 = vmatprep.subr.mxu1 %v326_v36  ;;  %v317_v45 = vld [vmem:[#allocation7 + $0xa0] sm:$0xff]  ;;  %v316_v46 = vld [vmem:[#allocation7 + $0x98] sm:$0xff]  ;;  %v315_v47 = vld [vmem:[#allocation7 + $0x90] sm:$0xff] }
  0x44   :  { %131 = vmatpush1.msra.mxu0 %v100_v16  ;;  %376 = vmatpush1.msra.mxu1 %v325_v37  ;;  %v314_v48 = vld [vmem:[#allocation7 + $0x88] sm:$0xff]  ;;  %v313_v49 = vld [vmem:[#allocation7 + $0x80] sm:$0xff]  ;;  %v312_v50 = vld [vmem:[#allocation7 + $0x78] sm:$0xff] }
  0x45   :  { %132 = vmatprep.subr.mxu0 %v99_v17  ;;  %377 = vmatprep.subr.mxu1 %v324_v38  ;;  %v311_v51 = vld [vmem:[#allocation7 + $0x70] sm:$0xff]  ;;  %v310_v52 = vld [vmem:[#allocation7 + $0x68] sm:$0xff]  ;;  %v309_v53 = vld [vmem:[#allocation7 + $0x60] sm:$0xff] }
  0x46   :  { %133 = vmatpush1.msra.mxu0 %v98_v18  ;;  %378 = vmatpush1.msra.mxu1 %v323_v39  ;;  %v308_v54 = vld [vmem:[#allocation7 + $0x58] sm:$0xff]  ;;  %v307_v55 = vld [vmem:[#allocation7 + $0x50] sm:$0xff]  ;;  %v306_v56 = vld [vmem:[#allocation7 + $0x48] sm:$0xff] }
  0x47   :  { %134 = vmatprep.subr.mxu0 %v97_v19  ;;  %379 = vmatprep.subr.mxu1 %v322_v40  ;;  %v305_v57 = vld [vmem:[#allocation7 + $0x40] sm:$0xff]  ;;  %v304_v58 = vld [vmem:[#allocation7 + $0x38] sm:$0xff]  ;;  %v303_v59 = vld [vmem:[#allocation7 + $0x30] sm:$0xff] }
  0x48   :  { %135 = vmatpush1.msra.mxu0 %v96_v20  ;;  %380 = vmatpush1.msra.mxu1 %v321_v41  ;;  %v302_v60 = vld [vmem:[#allocation7 + $0x28] sm:$0xff]  ;;  %v301_v61 = vld [vmem:[#allocation7 + $0x20] sm:$0xff]  ;;  %v300_v62 = vld [vmem:[#allocation7 + $0x18] sm:$0xff] }
  0x49   :  { %136 = vmatprep.subr.mxu0 %v95_v21  ;;  %381 = vmatprep.subr.mxu1 %v320_v42  ;;  %v299_v63 = vld [vmem:[#allocation7 + $0x10] sm:$0xff]  ;;  %v298_v0 = vld [vmem:[#allocation7 + $0x8] sm:$0xff]  ;;  %v297_v1 = vld [vmem:[#allocation7] sm:$0xff] }
  0x4a   :  { %137 = vmatpush1.msra.mxu0 %v94_v22  ;;  %382 = vmatpush1.msra.mxu1 %v319_v43  ;;  %v360_v2 = vld [vmem:[#allocation7 + $0x1f8] sm:$0xff]  ;;  %v359_v3 = vld [vmem:[#allocation7 + $0x1f0] sm:$0xff]  ;;  %v358_v4 = vld [vmem:[#allocation7 + $0x1e8] sm:$0xff] }
  0x4b   :  { %138 = vmatprep.subr.mxu0 %v93_v23  ;;  %383 = vmatprep.subr.mxu1 %v318_v44  ;;  %v357_v5 = vld [vmem:[#allocation7 + $0x1e0] sm:$0xff]  ;;  %v356_v6 = vld [vmem:[#allocation7 + $0x1d8] sm:$0xff]  ;;  %v355_v7 = vld [vmem:[#allocation7 + $0x1d0] sm:$0xff] }
  0x4c   :  { %139 = vmatpush1.msra.mxu0 %v92_v24  ;;  %384 = vmatpush1.msra.mxu1 %v317_v45  ;;  %v354_v8 = vld [vmem:[#allocation7 + $0x1c8] sm:$0xff]  ;;  %v353_v9 = vld [vmem:[#allocation7 + $0x1c0] sm:$0xff]  ;;  %v352_v10 = vld [vmem:[#allocation7 + $0x1b8] sm:$0xff] }
  0x4d   :  { %140 = vmatprep.subr.mxu0 %v91_v25  ;;  %385 = vmatprep.subr.mxu1 %v316_v46  ;;  %v351_v11 = vld [vmem:[#allocation7 + $0x1b0] sm:$0xff]  ;;  %v350_v12 = vld [vmem:[#allocation7 + $0x1a8] sm:$0xff]  ;;  %v349_v13 = vld [vmem:[#allocation7 + $0x1a0] sm:$0xff] }
  0x4e   :  { %141 = vmatpush1.msra.mxu0 %v90_v26  ;;  %386 = vmatpush1.msra.mxu1 %v315_v47  ;;  %v348_v14 = vld [vmem:[#allocation7 + $0x198] sm:$0xff]  ;;  %v347_v15 = vld [vmem:[#allocation7 + $0x190] sm:$0xff]  ;;  %v346_v16 = vld [vmem:[#allocation7 + $0x188] sm:$0xff] }
  0x4f   :  { %142 = vmatprep.subr.mxu0 %v89_v27  ;;  %387 = vmatprep.subr.mxu1 %v314_v48  ;;  %v345_v17 = vld [vmem:[#allocation7 + $0x180] sm:$0xff]  ;;  %v344_v18 = vld [vmem:[#allocation7 + $0x178] sm:$0xff]  ;;  %v343_v19 = vld [vmem:[#allocation7 + $0x170] sm:$0xff] }
  0x50   :  { %143 = vmatpush1.msra.mxu0 %v88_v28  ;;  %388 = vmatpush1.msra.mxu1 %v313_v49  ;;  %v342_v20 = vld [vmem:[#allocation7 + $0x168] sm:$0xff]  ;;  %v341_v21 = vld [vmem:[#allocation7 + $0x160] sm:$0xff]  ;;  %v340_v22 = vld [vmem:[#allocation7 + $0x158] sm:$0xff] }
  0x51   :  { %144 = vmatprep.subr.mxu0 %v87_v29  ;;  %389 = vmatprep.subr.mxu1 %v312_v50  ;;  %v339_v23 = vld [vmem:[#allocation7 + $0x150] sm:$0xff]  ;;  %v338_v24 = vld [vmem:[#allocation7 + $0x148] sm:$0xff]  ;;  %v337_v25 = vld [vmem:[#allocation7 + $0x140] sm:$0xff] }
  0x52   :  { %145 = vmatpush1.msra.mxu0 %v86_v30  ;;  %390 = vmatpush1.msra.mxu1 %v311_v51  ;;  %v336_v26 = vld [vmem:[#allocation7 + $0x138] sm:$0xff]  ;;  %v335_v27 = vld [vmem:[#allocation7 + $0x130] sm:$0xff]  ;;  %v334_v28 = vld [vmem:[#allocation7 + $0x128] sm:$0xff] }
  0x53   :  { %146 = vmatprep.subr.mxu0 %v85_v31  ;;  %391 = vmatprep.subr.mxu1 %v310_v52  ;;  %v333_v29 = vld [vmem:[#allocation7 + $0x120] sm:$0xff]  ;;  %v332_v30 = vld [vmem:[#allocation7 + $0x118] sm:$0xff]  ;;  %v331_v31 = vld [vmem:[#allocation7 + $0x110] sm:$0xff] }
  0x54   :  { %147 = vmatpush1.msra.mxu0 %v84_v32  ;;  %392 = vmatpush1.msra.mxu1 %v309_v53  ;;  %v330_v32 = vld [vmem:[#allocation7 + $0x108] sm:$0xff]  ;;  %v477_v34 = vld [vmem:[#allocation8 + $0xf8] sm:$0xff]  ;;  %v476_v36 = vld [vmem:[#allocation8 + $0xf0] sm:$0xff] }
  0x55   :  { %181 = vmatmul.mubr.f32.vlgmr.msra.gmra.mxu0 %v83_v33  ;;  %393 = vmatprep.subr.mxu1 %v308_v54  ;;  %v329_v33 = vld [vmem:[#allocation7 + $0x100] sm:$0xff]  ;;  %v461_v35 = vld [vmem:[#allocation8 + $0x78] sm:$0xff]  ;;  %v460_v37 = vld [vmem:[#allocation8 + $0x70] sm:$0xff] }
  0x56   :  { %394 = vmatpush1.msra.mxu1 %v307_v55  ;;  %595 = vmatprep.subr.mxu0 %v477_v34  ;;  %v475_v38 = vld [vmem:[#allocation8 + $0xe8] sm:$0xff]  ;;  %v474_v40 = vld [vmem:[#allocation8 + $0xe0] sm:$0xff]  ;;  %v473_v42 = vld [vmem:[#allocation8 + $0xd8] sm:$0xff]  ;;  %v768_v34 = vmov 1966171168  }
  0x57   :  { %395 = vmatprep.subr.mxu1 %v306_v56  ;;  %596 = vmatpush3.msra.mxu0 %v461_v35  ;;  %v459_v39 = vld [vmem:[#allocation8 + $0x68] sm:$0xff]  ;;  %v458_v41 = vld [vmem:[#allocation8 + $0x60] sm:$0xff]  ;;  %v457_v43 = vld [vmem:[#allocation8 + $0x58] sm:$0xff]  ;;  %v232_v35 = vunpack.c.l.s4 %v768_v34 }
  0x58   :  { %396 = vmatpush1.msra.mxu1 %v305_v57  ;;  %597 = vmatprep.subr.mxu0 %v476_v36  ;;  %v472_v44 = vld [vmem:[#allocation8 + $0xd0] sm:$0xff]  ;;  %v471_v46 = vld [vmem:[#allocation8 + $0xc8] sm:$0xff]  ;;  %v470_v48 = vld [vmem:[#allocation8 + $0xc0] sm:$0xff]  ;;  %v234_v36 = vlaneseq }
  0x59   :  { %397 = vmatprep.subr.mxu1 %v304_v58  ;;  %598 = vmatpush3.msra.mxu0 %v460_v37  ;;  %v456_v45 = vld [vmem:[#allocation8 + $0x50] sm:$0xff]  ;;  %v455_v47 = vld [vmem:[#allocation8 + $0x48] sm:$0xff]  ;;  %v454_v49 = vld [vmem:[#allocation8 + $0x40] sm:$0xff]  ;;  %v233_v37 = vunpack.c.0.s8 %v232_v35 }
  0x5a   :  { %398 = vmatpush1.msra.mxu1 %v303_v59  ;;  %599 = vmatprep.subr.mxu0 %v475_v38  ;;  %v469_v50 = vld [vmem:[#allocation8 + $0xb8] sm:$0xff]  ;;  %v468_v52 = vld [vmem:[#allocation8 + $0xb0] sm:$0xff]  ;;  %v467_v54 = vld [vmem:[#allocation8 + $0xa8] sm:$0xff]  ;;  %v235_v38 = vshrl.u32 %v234_v36, 7 }
  0x5b   :  { %399 = vmatprep.subr.mxu1 %v302_v60  ;;  %600 = vmatpush3.msra.mxu0 %v459_v39  ;;  %v453_v51 = vld [vmem:[#allocation8 + $0x38] sm:$0xff]  ;;  %v452_v53 = vld [vmem:[#allocation8 + $0x30] sm:$0xff]  ;;  %v451_v55 = vld [vmem:[#allocation8 + $0x28] sm:$0xff] }
  0x5c   :  { %400 = vmatpush1.msra.mxu1 %v301_v61  ;;  %601 = vmatprep.subr.mxu0 %v474_v40  ;;  %v466_v56 = vld [vmem:[#allocation8 + $0xa0] sm:$0xff]  ;;  %v236_v40 = vsub.s32 %v233_v37, %v235_v38 }
  0x5d   :  { %401 = vmatprep.subr.mxu1 %v300_v62  ;;  %602 = vmatpush3.msra.mxu0 %v458_v41  ;;  %v450_v57 = vld [vmem:[#allocation8 + $0x20] sm:$0xff] }
  0x5e   :  { %402 = vmatpush1.msra.mxu1 %v299_v63  ;;  %603 = vmatprep.subr.mxu0 %v473_v42 }
  0x5f   :  { %403 = vmatprep.subr.mxu1 %v298_v0  ;;  %604 = vmatpush3.msra.mxu0 %v457_v43 }
  0x60   :  { %404 = vmatpush1.msra.mxu1 %v297_v1  ;;  %605 = vmatprep.subr.mxu0 %v472_v44  ;;  %v223_v44 = vld [vmem:[%s860_s2] sm:$0x3] }
  0x61   :  { %405 = vmatprep.subr.mxu1 %v360_v2  ;;  %606 = vmatpush3.msra.mxu0 %v456_v45 }
  0x62   :  { %406 = vmatpush2.msra.mxu1 %v359_v3  ;;  %607 = vmatprep.subr.mxu0 %v471_v46  ;;  %v251_v46 = vsub.s32 0, %v235_v38 }
  0x63   :  { %407 = vmatprep.subr.mxu1 %v358_v4  ;;  %608 = vmatpush3.msra.mxu0 %v455_v47  ;;  %v255_v47 = vsub.s32 1, %v235_v38 }
  0x64   :  { %408 = vmatpush2.msra.mxu1 %v357_v5  ;;  %609 = vmatprep.subr.mxu0 %v470_v48 }
  0x65   :  { %409 = vmatprep.subr.mxu1 %v356_v6  ;;  %610 = vmatpush3.msra.mxu0 %v454_v49 }
  0x66   :  { %410 = vmatpush2.msra.mxu1 %v355_v7  ;;  %611 = vmatprep.subr.mxu0 %v469_v50 }
  0x67   :  { %411 = vmatprep.subr.mxu1 %v354_v8  ;;  %612 = vmatpush3.msra.mxu0 %v453_v51 }
  0x68   :  { %412 = vmatpush2.msra.mxu1 %v353_v9  ;;  %613 = vmatprep.subr.mxu0 %v468_v52 }
  0x69   :  { %413 = vmatprep.subr.mxu1 %v352_v10  ;;  %614 = vmatpush3.msra.mxu0 %v452_v53 }
  0x6a   :  { %414 = vmatpush2.msra.mxu1 %v351_v11  ;;  %615 = vmatprep.subr.mxu0 %v467_v54 }
  0x6b   :  { %415 = vmatprep.subr.mxu1 %v350_v12  ;;  %616 = vmatpush3.msra.mxu0 %v451_v55  ;;  %v247_v55 = vld [vmem:[%s861_s3] sm:$0x3] }
  0x6c   :  { %416 = vmatpush2.msra.mxu1 %v349_v13  ;;  %617 = vmatprep.subr.mxu0 %v466_v56 }
  0x6d   :  { %417 = vmatprep.subr.mxu1 %v348_v14  ;;  %618 = vmatpush3.msra.mxu0 %v450_v57 }
  0x6e   :  { %418 = vmatpush2.msra.mxu1 %v347_v15 }
  0x6f   :  { %419 = vmatprep.subr.mxu1 %v346_v16 }
  0x70   :  { %420 = vmatpush2.msra.mxu1 %v345_v17 }
  0x71   :  { %421 = vmatprep.subr.mxu1 %v344_v18 }
  0x72   :  { %422 = vmatpush2.msra.mxu1 %v343_v19 }
  0x73   :  { %423 = vmatprep.subr.mxu1 %v342_v20 }
  0x74   :  { %424 = vmatpush2.msra.mxu1 %v341_v21 }
  0x75   :  { %425 = vmatprep.subr.mxu1 %v340_v22 }
  0x76   :  { %426 = vmatpush2.msra.mxu1 %v339_v23 }
  0x77   :  { %427 = vmatprep.subr.mxu1 %v338_v24 }
  0x78   :  { %428 = vmatpush2.msra.mxu1 %v337_v25 }
  0x79   :  { %429 = vmatprep.subr.mxu1 %v336_v26 }
  0x7a   :  { %430 = vmatpush2.msra.mxu1 %v335_v27 }
  0x7b   :  { %431 = vmatprep.subr.mxu1 %v334_v28 }
  0x7c   :  { %432 = vmatpush2.msra.mxu1 %v333_v29 }
  0x7d   :  { %433 = vmatprep.subr.mxu1 %v332_v30 }
  0x7e   :  { %434 = vmatpush2.msra.mxu1 %v331_v31 }
  0x7f   :  { %435 = vmatprep.subr.mxu1 %v330_v32 }
  0x80   :  { %436 = vmatpush2.msra.mxu1 %v329_v33 }
 0x115   :  { %v827_v58 = vpop.f32.mrf.mxu0 }
 0x116   :  { %v187_v59 = vmul.f32 %v827_v58, %v827_v58  ;;  %v189_v60 = vrot.slane %v827_v58, 4 }
 0x117   :  { %v832_v61 = vpop.f32.mrf.mxu0 }
 0x118   :  { %v190_v62 = vadd.f32 %v189_v60, %v827_v58  ;;  %v201_v63 = vrot.slane %v187_v59, 4  ;;  %v188_v0 = vmul.f32 %v832_v61, %v832_v61  ;;  %v195_v1 = vrot.slane %v832_v61, 4 }
 0x11a   :  { %v191_v2 = vrot.slane %v190_v62, 2  ;;  %v202_v3 = vadd.f32 %v201_v63, %v187_v59  ;;  %v196_v4 = vadd.f32 %v195_v1, %v832_v61  ;;  %v207_v5 = vrot.slane %v188_v0, 4 }
 0x11c   :  { %v192_v6 = vadd.f32 %v191_v2, %v190_v62  ;;  %v203_v7 = vrot.slane %v202_v3, 2  ;;  %v197_v8 = vrot.slane %v196_v4, 2  ;;  %v208_v9 = vadd.f32 %v207_v5, %v188_v0  ;;  %v449_v5 = vld [vmem:[#allocation8 + $0x18] sm:$0xff] }
 0x11e   :  { %v193_v10 = vrot.slane %v192_v6, 1  ;;  %v204_v11 = vadd.f32 %v203_v7, %v202_v3  ;;  %v198_v12 = vadd.f32 %v197_v8, %v196_v4  ;;  %v209_v13 = vrot.slane %v208_v9, 2  ;;  %v465_v4 = vld [vmem:[#allocation8 + $0x98] sm:$0xff]  ;;  %v448_v7 = vld [vmem:[#allocation8 + $0x10] sm:$0xff]  ;;  %v463_v8 = vld [vmem:[#allocation8 + $0x88] sm:$0xff] }
 0x11f   :  { %619 = vmatprep.subr.mxu0 %v465_v4 }
 0x120   :  { %v194_v14 = vadd.f32 %v193_v10, %v192_v6  ;;  %v205_v15 = vrot.slane %v204_v11, 1  ;;  %v199_v16 = vrot.slane %v198_v12, 1  ;;  %v210_v17 = vadd.f32 %v209_v13, %v208_v9  ;;  %620 = vmatpush3.msra.mxu0 %v449_v5  ;;  %v464_v6 = vld [vmem:[#allocation8 + $0x90] sm:$0xff]  ;;  %v446_v9 = vld [vmem:[#allocation8] sm:$0xff]  ;;  %v361_v10 = vld [vmem:[%s863_s5] sm:$0x3] }
 0x121   :  { %621 = vmatprep.subr.mxu0 %v464_v6  ;;  %s769_s5 = smov [#allocation10]  }
 0x122   :  { %v206_v18 = vadd.f32 %v205_v15, %v204_v11  ;;  %v213_v19 = vmul.f32 0.125, %v194_v14  ;;  %v211_v20 = vrot.slane %v210_v17, 1  ;;  %v200_v21 = vadd.f32 %v199_v16, %v198_v12  ;;  %622 = vmatpush3.msra.mxu0 %v448_v7 }
 0x123   :  { %623 = vmatprep.subr.mxu0 %v463_v8  ;;  %v366_v11 = vrot.slane %v361_v10, %v251_v46  ;;  %v370_v12 = vrot.slane %v361_v10, %v255_v47 }
 0x124   :  { %v215_v22 = vmul.f32 0.125, %v206_v18  ;;  %v217_v23 = vmul.f32 %v213_v19, %v213_v19  ;;  %v212_v24 = vadd.f32 %v211_v20, %v210_v17  ;;  %v214_v25 = vmul.f32 0.125, %v200_v21  ;;  %v594_v20 = vld [vmem:[%s865_s7] ss:$0 sm:$0xff]  ;;  %s583_s7 = sshll.u32 %s769_s5, 4  ;;  %s584_s7 = int_to_ptr.vmem [resolvable:$true] %s583_s7 }
 0x125   :  { %s731_s9 = scalar_lea.vmem %s584_s7, 128  ;;  %p736_p7 = scmp.lt.s32.totalorder %s584_s7, %s584_s7 }
 0x126   :  { %v219_v26 = vsub.f32 %v215_v22, %v217_v23  ;;  %v216_v27 = vmul.f32 0.125, %v212_v24  ;;  %v218_v28 = vmul.f32 %v214_v25, %v214_v25  ;;  %p732_p6 = scmp.ne.s32.totalorder %s584_s7, %s731_s9  ;;  %p737_p8 = scmp.lt.s32.totalorder %s731_s9, %s731_s9 }
 0x128   :  { %v221_v29 = vmax.f32 %v219_v26, 0.0  ;;  %v220_v30 = vsub.f32 %v216_v27, %v218_v28  ;;  %p738_p9 = por %p737_p8, %p736_p7 }
 0x12a   :  { %v224_v31 = vadd.f32 1e-05, %v221_v29  ;;  %v222_v32 = vmax.f32 %v220_v30, 0.0  ;;  %p739_p10 = pnand %p738_p9, %p732_p6 }
 0x12c   :  { %v225_v33 = vadd.f32 1e-05, %v222_v32  ;;  %641 = vrsqrt.f32 %v224_v31  ;;  %v573_v32 = vand.u32 127, %v234_v36 }
 0x12e   :  { %643 = vrsqrt.f32 %v225_v33  ;;  %vm574_vm1 = vcmp.lt.s32.totalorder %v573_v32, 4 }
 0x139   :  { %v642_v39 = vpop.eup %641 }
 0x13b   :  { %v644_v41 = vpop.eup %643 }
 0x13c   :  { %v230_v42 = vcombine.low %v642_v39, %v644_v41 }
 0x13e   :  { %v237_v43 = vrot.slane %v230_v42, %v236_v40 }
 0x140   :  { %v244_v45 = vrot.slane %v237_v43, %v236_v40 }
 0x142   :  { %v246_v48 = vmul.f32 %v244_v45, %v223_v44 }
 0x144   :  { %v252_v49 = vrot.slane %v246_v48, %v251_v46  ;;  %v256_v50 = vrot.slane %v246_v48, %v255_v47 }
 0x146   :  { %v259_v51 = vmul.f32 %v252_v49, %v213_v19  ;;  %v260_v52 = vmul.f32 %v256_v50, %v214_v25  ;;  %v281_v59 = vmul.f32 %v256_v50, %v832_v61  ;;  %v280_v62 = vmul.f32 %v252_v49, %v827_v58  ;;  %v447_v61 = vld [vmem:[#allocation8 + $0x8] sm:$0xff]  ;;  %v462_v58 = vld [vmem:[#allocation8 + $0x80] sm:$0xff] }
 0x147   :  { %624 = vmatpush3.msra.mxu0 %v447_v61 }
 0x148   :  { %v263_v53 = vcombine.low %v259_v51, %v260_v52  ;;  %625 = vmatprep.subr.mxu0 %v462_v58 }
 0x149   :  { %626 = vmatpush3.msra.mxu0 %v446_v9 }
 0x14a   :  { %v270_v54 = vrot.slane %v263_v53, %v236_v40 }
 0x14c   :  { %v277_v56 = vrot.slane %v270_v54, %v236_v40 }
 0x14e   :  { %v279_v57 = vsub.f32 %v247_v55, %v277_v56 }
 0x150   :  { %v290_v60 = vrot.slane %v279_v57, %v255_v47  ;;  %v286_v63 = vrot.slane %v279_v57, %v251_v46 }
 0x152   :  { %v294_v0 = vadd.f32 %v290_v60, %v281_v59  ;;  %v293_v1 = vadd.f32 %v286_v63, %v280_v62 }
 0x154   :  { %v296_v2 = vmax.f32 %v294_v0, 0.0  ;;  %v295_v3 = vmax.f32 %v293_v1, 0.0 }
 0x156   :  { %437 = vmatprep.mubr.f32.mxu1 %v296_v2 }
 0x157   :  { %438 = vmatmul.mubr.f32.vlgmr.msra.gmra.mxu1 %v295_v3 }
 0x217   :  { %v439_v13 = vpop.f32.mrf.mxu1 }
 0x218   :  { %v440_v14 = vadd.f32 %v439_v13, %v366_v11 }
 0x219   :  { %v441_v15 = vpop.f32.mrf.mxu1 }
 0x21a   :  { %v442_v16 = vadd.f32 %v441_v15, %v370_v12  ;;  %v444_v18 = vmax.f32 %v440_v14, 0.0 }
 0x21c   :  { %v445_v17 = vmax.f32 %v442_v16, 0.0 }
 0x21e   :  { %549 = vmatprep.mubr.f32.mxu0 %v445_v17 }
 0x21f   :  { %550 = vmatmul.mubr.f32.vlgmr.msra.gmra.mxu0 %v444_v18 }
 0x2df   :  { %v627_v19 = vpop.f32.mrf.mxu0 }
 0x2e1   :  { %v628_v21 = vpop.f32.mrf.mxu0 }
 0x2e2   :  { %v629_v22 = vadd.f32 %v628_v21, %v627_v19 }
 0x2e4   :  { %v552_v23 = vadd.f32 %v629_v22, %v594_v20 }
 0x2e6   :  { %v558_v24 = vand.u32 2147483647, %v552_v23  ;;  %v557_v38 = vmax.f32 %v552_v23, 0.0 }
 0x2e8   :  { %v559_v25 = vsub.f32 0.0, %v558_v24 }
 0x2ea   :  { %v560_v26 = vmul.f32 1.442695, %v559_v25 }
 0x2ec   :  { %645 = vpow2.f32 %v560_v26 }
 0x2f9   :  { %v646_v27 = vpop.eup %645 }
 0x2fa   :  { %v562_v28 = vadd.f32 1.0, %v646_v27  ;;  %v565_v29 = vmul.f32 -0.5, %v646_v27  ;;  %v568_v31 = vand.u32 2147483647, %v646_v27 }
 0x2fc   :  { %647 = vlog2.f32 %v562_v28  ;;  %v566_v30 = vadd.f32 1.0, %v565_v29  ;;  %vm569_vm0 = vcmp.lt.f32.partialorder %v568_v31, 0.0004427343 }
 0x2fd   :  { %649 = vtanh.f32 %v552_v23 }
 0x2fe   :  { %v567_v37 = vmul.f32 %v646_v27, %v566_v30 }
 0x309   :  { %v648_v33 = vpop.eup %647 }
 0x30a   :  { %v650_v34 = vpop.eup %649  ;;  %v564_v35 = vmul.f32 0.6931472, %v648_v33 }
 0x30b   :  { %v556_v40 = vmul.f32 2.0, %v650_v34 }
 0x30c   :  { %v570_v39 = vsel %vm569_vm0, %v567_v37, %v564_v35 }
 0x30d   :  { %v571_v41 = vadd.f32 %v570_v39, %v557_v38 }
 0x30f   :  { %v575_v42 = vsel %vm574_vm1, %v556_v40, %v571_v41 }
 0x310   :  { %576 = vst [vmem:[#allocation10] sm:$0xff] %v575_v42 }
 0x311   :  { %742 = shalt.err (!%p739_p10)
}
 0x312   :  { %586 = dma.vmem_to_hbm [thread:$0]  %s584_s7, 128, %s866_s8, [#allocation4]  }
 0x313   :  { %757 = dma.done.wait [#allocation4], 128  }
 0x314   :  { %758 = vsyncadd [#allocation4], 4294967168 }
 0x315   :  { %590 = vsyncpa [#allocation3], 1 }
 0x316   :  { %591 = vsyncpa [#allocation6], 1 }
 0x317   :  { %592 = vsyncpa [#allocation9], 1 }
 0x318   :  { %593 = vsyncpa [#allocation4], 1 }

</bundles_post_ra>
